<compile_context>
chip_gen: v7x
topology: tpu7x:2x2x1
jax: 0.10.0
libtpu: 0.0.40
codegen_flags: <defaults>
</compile_context>

<pallas_src>
import functools

import jax
import jax.numpy as jnp
from jax.experimental import pallas as pl
from jax.experimental.pallas import tpu as pltpu


IGNORE_LABEL = -1


def _ce_kernel(score_ref, target_ref, loss_out_ref, cnt_out_ref,
               loss_acc_ref, cnt_acc_ref, *, ignore_label, num_pixels,
               tile_rows, rows_per_split, acc_rows):
    # grid = (batch, pixel_split, row_tiles): first two parallel, last reduces.
    j = pl.program_id(2)

    @pl.when(j == 0)
    def _():
        loss_acc_ref[...] = jnp.zeros_like(loss_acc_ref)
        cnt_acc_ref[...] = jnp.zeros_like(cnt_acc_ref)

    x = score_ref[0].astype(jnp.float32)          # (C, TR, 128) fully packed
    t = target_ref[0]                             # (TR, 128) int32

    # Numerically stable log-sum-exp over the class axis: C-term whole-vreg
    # VALU trees over the leading axis, no cross-lane/sublane relayout.
    m = jnp.max(x, axis=0)                        # (TR, 128)
    # NOTE: on v6e/v7x casting (x - m) to bf16 before exp would double the EUP
    # push rate; kept in f32 so the same kernel is also optimal on v5e.
    e = jnp.exp(x - m[jnp.newaxis])               # (C, TR, 128), args <= 0
    lse = jnp.log(jnp.sum(e, axis=0)) + m         # (TR, 128)

    # Gather the logit at the target class with a VPU compare + C-term sum
    # (C is tiny; deliberately NOT an MXU matmul -- the kernel is HBM bound).
    cls = jax.lax.broadcasted_iota(jnp.int32, x.shape, dimension=0)
    picked = jnp.sum(jnp.where(cls == t[jnp.newaxis], x, 0.0), axis=0)

    # Mask ignore-label pixels and any padded / out-of-range tail positions.
    # (keep this a lane-select, NOT multiply-by-mask: garbage tail data may
    #  hold NaN/Inf and must not propagate.)
    row = jax.lax.broadcasted_iota(jnp.int32, t.shape, dimension=0)
    lane = jax.lax.broadcasted_iota(jnp.int32, t.shape, dimension=1)
    grow = pl.program_id(1) * rows_per_split + j * tile_rows + row
    full_rows, rem = divmod(num_pixels, 128)      # static Python ints
    in_range = (grow < full_rows) | ((grow == full_rows) & (lane < rem))
    valid = (t != ignore_label) & in_range

    contrib = jnp.where(valid, lse - picked, 0.0)             # (TR, 128)
    cnt = valid.astype(jnp.float32)

    # Fold the tile contribution into a single vreg-sized accumulator with
    # whole-vreg adds (rows group naturally into (8, 128) vreg tiles).
    if tile_rows == acc_rows:
        loss_acc_ref[...] += contrib
        cnt_acc_ref[...] += cnt
    else:
        groups = tile_rows // acc_rows
        loss_acc_ref[...] += contrib.reshape(groups, acc_rows, 128).sum(0)
        cnt_acc_ref[...] += cnt.reshape(groups, acc_rows, 128).sum(0)

    # Spill the vreg-sized partials once per (batch, split); wrapper reduces.
    @pl.when(j == pl.num_programs(2) - 1)
    def _():
        loss_out_ref[...] = loss_acc_ref[...].reshape(loss_out_ref.shape)
        cnt_out_ref[...] = cnt_acc_ref[...].reshape(cnt_out_ref.shape)


def _choose_tile_rows(num_classes, num_rows, itemsize,
                      target_block_bytes=2 << 20, max_rows=4096):
    """Rows-of-128-pixels per block: ~2 MiB of logits, multiple of 8."""
    bytes_per_row = num_classes * 128 * itemsize
    desired = max(8, min(target_block_bytes // max(1, bytes_per_row), max_rows))
    desired = (desired // 8) * 8
    if num_rows <= desired:
        return num_rows          # full-extent block (any size is legal)
    return desired


def _cross_entropy_mean(score_nchw, target_nhw, *, ignore_label=IGNORE_LABEL,
                        pixel_splits=2):
    """nn.CrossEntropyLoss(ignore_index=ignore_label) semantics (mean)."""
    n, c, h, w = score_nchw.shape
    l = h * w
    r = pl.cdiv(l, 128)
    l_pad = r * 128

    # Free reshapes of the native NCHW layout; pad only if H*W % 128 != 0.
    score3 = score_nchw.reshape(n, c, l)
    target3 = target_nhw.reshape(n, 1, l).astype(jnp.int32)
    if l_pad != l:
        score3 = jnp.pad(score3, ((0, 0), (0, 0), (0, l_pad - l)))
        target3 = jnp.pad(target3, ((0, 0), (0, 0), (0, l_pad - l)),
                          constant_values=ignore_label)
    score4 = score3.reshape(n, c, r, 128)
    target4 = target3.reshape(n, r, 128)

    itemsize = jnp.dtype(score_nchw.dtype).itemsize
    tile_rows = _choose_tile_rows(c, r, itemsize)
    nt = pl.cdiv(r, tile_rows)
    splits = max(1, min(pixel_splits, nt))      # v7x: 2 TCs; no-op on v5e/v6e
    nt_per_split = pl.cdiv(nt, splits)
    rows_per_split = nt_per_split * tile_rows
    acc_rows = 8 if tile_rows % 8 == 0 else tile_rows

    def score_map(i, s, j):
        rb = jnp.minimum(s * nt_per_split + j, nt - 1)   # clamp overhang tiles
        return (i, 0, rb, 0)

    def target_map(i, s, j):
        rb = jnp.minimum(s * nt_per_split + j, nt - 1)
        return (i, rb, 0)

    kernel = functools.partial(
        _ce_kernel, ignore_label=ignore_label, num_pixels=l,
        tile_rows=tile_rows, rows_per_split=rows_per_split, acc_rows=acc_rows)

    cost = pl.CostEstimate(
        flops=int(n * l * (3 * c + 6)),
        transcendentals=int(n * l * (c + 1)),
        bytes_accessed=int(n * l_pad * (c * itemsize + 4)
                           + 2 * n * splits * acc_rows * 128 * 4))

    loss_p, cnt_p = pl.pallas_call(
        kernel,
        out_shape=(jax.ShapeDtypeStruct((n, splits, acc_rows, 128), jnp.float32),
                   jax.ShapeDtypeStruct((n, splits, acc_rows, 128), jnp.float32)),
        grid_spec=pltpu.PrefetchScalarGridSpec(
            num_scalar_prefetch=0,
            grid=(n, splits, nt_per_split),
            in_specs=[
                pl.BlockSpec((1, c, tile_rows, 128), score_map),
                pl.BlockSpec((1, tile_rows, 128), target_map),
            ],
            out_specs=[
                pl.BlockSpec((1, 1, acc_rows, 128), lambda i, s, j: (i, s, 0, 0)),
                pl.BlockSpec((1, 1, acc_rows, 128), lambda i, s, j: (i, s, 0, 0)),
            ],
            scratch_shapes=[
                pltpu.VMEM((acc_rows, 128), jnp.float32),   # loss partials
                pltpu.VMEM((acc_rows, 128), jnp.float32),   # valid-pixel count
            ],
        ),
        compiler_params=pltpu.CompilerParams(
            dimension_semantics=("parallel", "parallel", "arbitrary"),
            vmem_limit_bytes=32 * 1024 * 1024),
        cost_estimate=cost,
    )(score4, target4)

    loss_sum = jnp.sum(loss_p)
    count = jnp.sum(cnt_p)
    # count == 0 -> NaN, matching torch.nn.CrossEntropyLoss behavior.
    return (loss_sum / count).astype(jnp.float32)


class CrossEntropyConfig:
    """Deterministic, in-script stand-in for the original `config` object."""
    num_outputs = 1
    balance_weights = (0.4, 1.0)   # len != len(score) -> sb_weights branch
    sb_weights = 0.5


def cross_entropy_forward(score, target, config=CrossEntropyConfig,
                          ignore_label=IGNORE_LABEL):
    """Mirrors CrossEntropy.forward (weight=None)."""
    # TODO(synk): per-class `weight` vector of nn.CrossEntropyLoss not implemented
    # (the reference module is constructed with weight=None).
    if config.num_outputs == 1:
        score = [score]
    balance_weights = config.balance_weights
    sb_weights = config.sb_weights
    if len(balance_weights) == len(score):
        return sum(w * _cross_entropy_mean(x, target, ignore_label=ignore_label)
                   for w, x in zip(balance_weights, score))
    elif len(score) == 1:
        return sb_weights * _cross_entropy_mean(score[0], target,
                                                ignore_label=ignore_label)
    else:
        raise ValueError('lengths of prediction and target are not identical!')


def _reference_forward(score, target, config=CrossEntropyConfig,
                       ignore_label=IGNORE_LABEL):
    """Pure-JAX reference of the same semantics (silent sanity check)."""
    def ce(s, t):
        n, c, h, w = s.shape
        logits = jnp.transpose(s, (0, 2, 3, 1)).reshape(-1, c).astype(jnp.float32)
        tgt = t.reshape(-1)
        logz = jax.nn.logsumexp(logits, axis=-1)
        picked = jnp.take_along_axis(
            logits, jnp.clip(tgt, 0, c - 1)[:, None], axis=-1)[:, 0]
        valid = tgt != ignore_label
        loss = jnp.where(valid, logz - picked, 0.0)
        return jnp.sum(loss) / jnp.sum(valid.astype(jnp.float32))

    if config.num_outputs == 1:
        score = [score]
    if len(config.balance_weights) == len(score):
        return sum(w * ce(x, target)
                   for w, x in zip(config.balance_weights, score))
    return config.sb_weights * ce(score[0], target)


if __name__ == "__main__":
    key = jax.random.PRNGKey(0)
    k_score, k_target = jax.random.split(key)

    N, C, H, W = 2, 4, 16, 16
    score = jax.random.normal(k_score, (N, C, H, W), dtype=jnp.float32)
    # targets in [-1, C): includes ignore_label = -1 pixels
    target = jax.random.randint(k_target, (N, H, W), minval=-1, maxval=C,
                                dtype=jnp.int32)

    loss = cross_entropy_forward(score, target)
    loss = jax.block_until_ready(loss)

    ref = jax.block_until_ready(_reference_forward(score, target))
    assert jnp.allclose(loss, ref, rtol=1e-5, atol=1e-5), (loss, ref)

    print("KERNEL_OK")
</pallas_src>

<mosaic_0001>
module attributes {stable_mosaic.version = 11 : i64} {
  func.func @_ce_kernel(%arg0: i32, %arg1: i32, %arg2: i32, %arg3: memref<1x4x2x128xf32, #tpu.memory_space<vmem>>, %arg4: memref<1x2x128xi32, #tpu.memory_space<vmem>>, %arg5: memref<1x1x2x128xf32, #tpu.memory_space<vmem>>, %arg6: memref<1x1x2x128xf32, #tpu.memory_space<vmem>>, %arg7: memref<2x128xf32, #tpu.memory_space<vmem>>, %arg8: memref<2x128xf32, #tpu.memory_space<vmem>>) attributes {dimension_semantics = [#tpu.dimension_semantics<parallel>, #tpu.dimension_semantics<parallel>, #tpu.dimension_semantics<arbitrary>], iteration_bounds = array<i64: 2, 1, 1>, scalar_prefetch = 0 : i64, scratch_operands = 2 : i64, tpu.core_type = #tpu.core_type<tc>, window_params = [{transform_indices = @transform_0, window_bounds = array<i64: 1, 4, 2, 128>}, {transform_indices = @transform_1, window_bounds = array<i64: 1, 2, 128>}, {transform_indices = @transform_2, window_bounds = array<i64: 1, 1, 2, 128>}, {transform_indices = @transform_3, window_bounds = array<i64: 1, 1, 2, 128>}]} {
    %c0_i32 = arith.constant 0 : i32
    %0 = arith.cmpi eq, %arg2, %c0_i32 : i32
    %1 = arith.extui %0 : i1 to i32
    %c0_i32_0 = arith.constant 0 : i32
    %2 = arith.cmpi ne, %1, %c0_i32_0 : i32
    scf.if %2 {
      %cst_25 = arith.constant 0.000000e+00 : f32
      %54 = vector.broadcast %cst_25 : f32 to vector<2x128xf32>
      %c0_26 = arith.constant 0 : index
      %c0_27 = arith.constant 0 : index
      %55 = vector.load %arg7[%c0_26, %c0_27] : memref<2x128xf32, #tpu.memory_space<vmem>>, vector<2x128xf32>
      tpu.vector_store %arg7[%c0_26, %c0_27], %54 {strides = array<i32>} : memref<2x128xf32, #tpu.memory_space<vmem>>, vector<2x128xf32>,
      %cst_28 = arith.constant 0.000000e+00 : f32
      %56 = vector.broadcast %cst_28 : f32 to vector<2x128xf32>
      %c0_29 = arith.constant 0 : index
      %c0_30 = arith.constant 0 : index
      %57 = vector.load %arg8[%c0_29, %c0_30] : memref<2x128xf32, #tpu.memory_space<vmem>>, vector<2x128xf32>
      tpu.vector_store %arg8[%c0_29, %c0_30], %56 {strides = array<i32>} : memref<2x128xf32, #tpu.memory_space<vmem>>, vector<2x128xf32>,
    } else {
    }
    %c0 = arith.constant 0 : index
    %c0_1 = arith.constant 0 : index
    %c0_2 = arith.constant 0 : index
    %c0_3 = arith.constant 0 : index
    %3 = vector.load %arg3[%c0, %c0_1, %c0_2, %c0_3] : memref<1x4x2x128xf32, #tpu.memory_space<vmem>>, vector<1x4x2x128xf32>
    %4 = vector.shape_cast %3 : vector<1x4x2x128xf32> to vector<4x2x128xf32>
    %c0_4 = arith.constant 0 : index
    %c0_5 = arith.constant 0 : index
    %c0_6 = arith.constant 0 : index
    %5 = vector.load %arg4[%c0_4, %c0_5, %c0_6] : memref<1x2x128xi32, #tpu.memory_space<vmem>>, vector<1x2x128xi32>
    %6 = vector.shape_cast %5 : vector<1x2x128xi32> to vector<2x128xi32>
    %cst = arith.constant dense<0xFF800000> : vector<2x128xf32>
    %7 = vector.multi_reduction <maximumf>, %4, %cst [0] : vector<4x2x128xf32> to vector<2x128xf32>
    %8 = vector.shape_cast %7 : vector<2x128xf32> to vector<1x2x128xf32>
    %9 = vector.broadcast %8 : vector<1x2x128xf32> to vector<4x2x128xf32>
    %10 = arith.subf %4, %9 : vector<4x2x128xf32>
    %11 = math.exp %10 : vector<4x2x128xf32>
    %cst_7 = arith.constant dense<0.000000e+00> : vector<2x128xf32>
    %12 = vector.multi_reduction <add>, %11, %cst_7 [0] : vector<4x2x128xf32> to vector<2x128xf32>
    %13 = math.log %12 : vector<2x128xf32>
    %14 = arith.addf %13, %7 : vector<2x128xf32>
    %15 = tpu.iota {dimensions = array<i32: 0>} : vector<4x2x128xi32>
    %16 = vector.shape_cast %6 : vector<2x128xi32> to vector<1x2x128xi32>
    %17 = vector.broadcast %16 : vector<1x2x128xi32> to vector<4x2x128xi32>
    %18 = arith.cmpi eq, %15, %17 : vector<4x2x128xi32>
    %cst_8 = arith.constant 0.000000e+00 : f32
    %19 = vector.broadcast %cst_8 : f32 to vector<4x2x128xf32>
    %20 = arith.select %18, %4, %19 : vector<4x2x128xi1>, vector<4x2x128xf32>
    %cst_9 = arith.constant dense<0.000000e+00> : vector<2x128xf32>
    %21 = vector.multi_reduction <add>, %20, %cst_9 [0] : vector<4x2x128xf32> to vector<2x128xf32>
    %22 = tpu.iota {dimensions = array<i32: 0>} : vector<2x128xi32>
    %23 = tpu.iota {dimensions = array<i32: 1>} : vector<2x128xi32>
    %c2_i32 = arith.constant 2 : i32
    %24 = arith.muli %arg1, %c2_i32 : i32
    %c2_i32_10 = arith.constant 2 : i32
    %25 = arith.muli %arg2, %c2_i32_10 : i32
    %26 = arith.addi %24, %25 : i32
    %27 = vector.broadcast %26 : i32 to vector<2x128xi32>
    %28 = arith.addi %27, %22 : vector<2x128xi32>
    %c2_i32_11 = arith.constant 2 : i32
    %29 = vector.broadcast %c2_i32_11 : i32 to vector<2x128xi32>
    %30 = arith.cmpi slt, %28, %29 : vector<2x128xi32>
    %c2_i32_12 = arith.constant 2 : i32
    %31 = vector.broadcast %c2_i32_12 : i32 to vector<2x128xi32>
    %32 = arith.cmpi eq, %28, %31 : vector<2x128xi32>
    %c0_i32_13 = arith.constant 0 : i32
    %33 = vector.broadcast %c0_i32_13 : i32 to vector<2x128xi32>
    %34 = arith.cmpi slt, %23, %33 : vector<2x128xi32>
    %35 = arith.andi %32, %34 : vector<2x128xi1>
    %36 = arith.ori %30, %35 : vector<2x128xi1>
    %c-1_i32 = arith.constant -1 : i32
    %37 = vector.broadcast %c-1_i32 : i32 to vector<2x128xi32>
    %38 = arith.cmpi ne, %6, %37 : vector<2x128xi32>
    %39 = arith.andi %38, %36 : vector<2x128xi1>
    %40 = arith.subf %14, %21 : vector<2x128xf32>
    %cst_14 = arith.constant 0.000000e+00 : f32
    %41 = vector.broadcast %cst_14 : f32 to vector<2x128xf32>
    %42 = arith.select %39, %40, %41 : vector<2x128xi1>, vector<2x128xf32>
    %43 = arith.extui %39 : vector<2x128xi1> to vector<2x128xi32>
    %44 = arith.sitofp %43 : vector<2x128xi32> to vector<2x128xf32>
    %c0_15 = arith.constant 0 : index
    %c0_16 = arith.constant 0 : index
    %45 = vector.load %arg7[%c0_15, %c0_16] : memref<2x128xf32, #tpu.memory_space<vmem>>, vector<2x128xf32>
    %46 = arith.addf %45, %42 : vector<2x128xf32>
    %c0_17 = arith.constant 0 : index
    %c0_18 = arith.constant 0 : index
    %47 = vector.load %arg7[%c0_17, %c0_18] : memref<2x128xf32, #tpu.memory_space<vmem>>, vector<2x128xf32>
    tpu.vector_store %arg7[%c0_17, %c0_18], %46 {strides = array<i32>} : memref<2x128xf32, #tpu.memory_space<vmem>>, vector<2x128xf32>,
    %c0_19 = arith.constant 0 : index
    %c0_20 = arith.constant 0 : index
    %48 = vector.load %arg8[%c0_19, %c0_20] : memref<2x128xf32, #tpu.memory_space<vmem>>, vector<2x128xf32>
    %49 = arith.addf %48, %44 : vector<2x128xf32>
    %c0_21 = arith.constant 0 : index
    %c0_22 = arith.constant 0 : index
    %50 = vector.load %arg8[%c0_21, %c0_22] : memref<2x128xf32, #tpu.memory_space<vmem>>, vector<2x128xf32>
    tpu.vector_store %arg8[%c0_21, %c0_22], %49 {strides = array<i32>} : memref<2x128xf32, #tpu.memory_space<vmem>>, vector<2x128xf32>,
    %c0_i32_23 = arith.constant 0 : i32
    %51 = arith.cmpi eq, %arg2, %c0_i32_23 : i32
    %52 = arith.extui %51 : i1 to i32
    %c0_i32_24 = arith.constant 0 : i32
    %53 = arith.cmpi ne, %52, %c0_i32_24 : i32
    scf.if %53 {
      %c0_25 = arith.constant 0 : index
      %c0_26 = arith.constant 0 : index
      %54 = vector.load %arg7[%c0_25, %c0_26] : memref<2x128xf32, #tpu.memory_space<vmem>>, vector<2x128xf32>
      %55 = vector.shape_cast %54 : vector<2x128xf32> to vector<1x1x2x128xf32>
      %c0_27 = arith.constant 0 : index
      %c0_28 = arith.constant 0 : index
      %c0_29 = arith.constant 0 : index
      %c0_30 = arith.constant 0 : index
      %56 = vector.load %arg5[%c0_27, %c0_28, %c0_29, %c0_30] : memref<1x1x2x128xf32, #tpu.memory_space<vmem>>, vector<1x1x2x128xf32>
      tpu.vector_store %arg5[%c0_27, %c0_28, %c0_29, %c0_30], %55 {strides = array<i32>} : memref<1x1x2x128xf32, #tpu.memory_space<vmem>>, vector<1x1x2x128xf32>,
      %c0_31 = arith.constant 0 : index
      %c0_32 = arith.constant 0 : index
      %57 = vector.load %arg8[%c0_31, %c0_32] : memref<2x128xf32, #tpu.memory_space<vmem>>, vector<2x128xf32>
      %58 = vector.shape_cast %57 : vector<2x128xf32> to vector<1x1x2x128xf32>
      %c0_33 = arith.constant 0 : index
      %c0_34 = arith.constant 0 : index
      %c0_35 = arith.constant 0 : index
      %c0_36 = arith.constant 0 : index
      %59 = vector.load %arg6[%c0_33, %c0_34, %c0_35, %c0_36] : memref<1x1x2x128xf32, #tpu.memory_space<vmem>>, vector<1x1x2x128xf32>
      tpu.vector_store %arg6[%c0_33, %c0_34, %c0_35, %c0_36], %58 {strides = array<i32>} : memref<1x1x2x128xf32, #tpu.memory_space<vmem>>, vector<1x1x2x128xf32>,
    } else {
    }
    return
  }
  func.func @transform_0(%arg0: i32, %arg1: i32, %arg2: i32) -> (i32, i32, i32, i32) {
    %c1_i32 = arith.constant 1 : i32
    %0 = arith.muli %arg1, %c1_i32 : i32
    %1 = arith.addi %0, %arg2 : i32
    %c0_i32 = arith.constant 0 : i32
    %2 = arith.minsi %1, %c0_i32 : i32
    %c0_i32_0 = arith.constant 0 : i32
    %c0_i32_1 = arith.constant 0 : i32
    %c0_i32_2 = arith.constant 0 : i32
    return %arg0, %c0_i32_0, %2, %c0_i32_1 : i32, i32, i32, i32
  }
  func.func @transform_1(%arg0: i32, %arg1: i32, %arg2: i32) -> (i32, i32, i32) {
    %c1_i32 = arith.constant 1 : i32
    %0 = arith.muli %arg1, %c1_i32 : i32
    %1 = arith.addi %0, %arg2 : i32
    %c0_i32 = arith.constant 0 : i32
    %2 = arith.minsi %1, %c0_i32 : i32
    %c0_i32_0 = arith.constant 0 : i32
    %c0_i32_1 = arith.constant 0 : i32
    return %arg0, %2, %c0_i32_0 : i32, i32, i32
  }
  func.func @transform_2(%arg0: i32, %arg1: i32, %arg2: i32) -> (i32, i32, i32, i32) {
    %c0_i32 = arith.constant 0 : i32
    %c0_i32_0 = arith.constant 0 : i32
    %c0_i32_1 = arith.constant 0 : i32
    return %arg0, %arg1, %c0_i32, %c0_i32_0 : i32, i32, i32, i32
  }
  func.func @transform_3(%arg0: i32, %arg1: i32, %arg2: i32) -> (i32, i32, i32, i32) {
    %c0_i32 = arith.constant 0 : i32
    %c0_i32_0 = arith.constant 0 : i32
    %c0_i32_1 = arith.constant 0 : i32
    return %arg0, %arg1, %c0_i32, %c0_i32_0 : i32, i32, i32, i32
  }
}

</mosaic_0001>

<bundles_post_ra>
// kernel: tpu_custom_call.1
= control target key start
LH: loop header
LB: loop body
LE: loop exit
PB: predicated region body
PF: predicated region fallthrough
CT: control target
= control target key end

     0   :  { %9 = vsyncpa [#allocation5], 0  ;;  %s1175_s0 = inlined_call_operand.hbm [shape: f32[2,4,2,128], index: 0, kind: input, shape index: {}]   ;;  %s1176_s1 = inlined_call_operand.hbm [shape: s32[2,2,128], index: 1, kind: input, shape index: {}]   ;;  %s1177_s2 = inlined_call_operand.hbm [shape: f32[2,1,2,128], index: 2, kind: output, shape index: {0}]   ;;  %s1178_s3 = inlined_call_operand.hbm [shape: f32[2,1,2,128], index: 3, kind: output, shape index: {1}]  }
   0x1   :  { %11 = vsyncpa [#allocation5 + $0x1], 0 }
   0x2   :  { %12 = vsyncpa [#allocation8], 0 }
   0x3   :  { %14 = vsyncpa [#allocation8 + $0x1], 0 }
   0x4   :  { %15 = vsyncpa [#allocation6], 0 }
   0x5   :  { %17 = vsyncpa [#allocation6 + $0x1], 0 }
   0x6   :  { %18 = vsyncpa [#allocation11], 0 }
   0x7   :  { %20 = vsyncpa [#allocation11 + $0x1], 0  ;;  %s868_s12 = smov 0   ;;  %s870_s13 = smov 0  }
   0x8   :  { %s872_s14 = smov 0   ;;  %s874_s15 = smov 0  }
   0x9   :  { %s876_s16 = smov 0   ;;  %s878_s17 = smov 0  }
   0xa LB: > { %s554_s18 = sadd.s32 4294967295, %s839_s17   ;;  %s555_s19 = sadd.s32 4294967294, %s839_s17   ;;  %s839_s17 = sphi %s878_s17, %s26_s17   ;;  %s835_s16 = sphi %s876_s16, %s1199_s16   ;;  %s831_s15 = sphi %s874_s15, %s1198_s15   ;;  %s827_s14 = sphi %s872_s14, %s1197_s14   ;;  %s823_s13 = sphi %s870_s13, %s1196_s13   ;;  %s819_s12 = sphi %s868_s12, %s1195_s12  }
   0xb   : > { %s45_s20 = sadd.s32 1, %s835_s16  ;;  %s60_s21 = sadd.s32 1, %s827_s14 }
   0xc   : > { %p47_p0 = scmp.ge.s32.totalorder %s45_s20, 2  ;;  %p67_p1 = scmp.ne.s32.totalorder %s827_s14, %s823_s13 }
   0xd   : > { %p68_p2 = scmp.eq.s32.totalorder %s839_s17, 0  ;;  %p73_p3 = scmp.ne.s32.totalorder %s823_s13, %s819_s12 }
   0xe   : > { %s1201_s20 = smov (%p47_p0, %s45_s20), 0  ;;  %p74_p5 = scmp.eq.s32.totalorder %s554_s18, 0 }
   0xf   : > { %p909_p4 = por %p68_p2, %p67_p1  ;;  %s55_s23 = ssub.s32 %s835_s16, %s1201_s20 }
  0x10   : > { %p133_p6 = scmp.eq.s32.totalorder %s554_s18, 1  ;;  %p58_p7 = scmp.eq.s32.totalorder %s55_s23, 0 }
  0x11   : > { %p915_p8 = por %p74_p5, %p73_p3  ;;  %p139_p10 = scmp.eq.s32.totalorder %s555_s19, 1 }
  0x12   : > { %p919_p9 = por %p133_p6, %p67_p1  ;;  %p598_p13 = scmp.lt.s32.totalorder %s839_s17, 2 }
  0x13   : > { %s1182_s24 = scalar_select %p915_p8, 1, 0 }
  0x14   : > { %s1183_s25 = scalar_select %p919_p9, 1, 0 }
  0x15   : > { %s924_s26 = scalar_select %p58_p7, %s827_s14, %s60_s21  }
  0x16   : > { %p926_p11 = por %p139_p10, %p73_p3  ;;  %s933_s28 = sand.u32 1, %s827_s14  }
  0x17   : > { %s558_s29 = sshll.u32 %s933_s28, 3  ;;  %s575_s30 = sshll.u32 %s835_s16, 7 }
  0x18   : > { %s1184_s27 = scalar_select %p926_p11, 1, 0 }
  0x19   : > { %s940_s6 = scalar_lea.hbm %s1175_s0, %s575_s30  ;;  %s191_s7 = scalar_lea.vmem [#allocation4], %s558_s29 }
  0x1a   : > { %s202_s8 = sshll.u32 %s191_s7, 4  ;;  %p946_p0 = pnand %p598_p13, %p909_p4  ;;  %s942_s8 = int_to_ptr.vmem [resolvable:$true] %s202_s8 }
  0x1b   : > { %s188_s10 = scalar_lea.sflag [#allocation5], %s933_s28  ;;  %s661_s11 = scalar_lea.hbm %s940_s6, 128 }
  0x1c   : > { %p662_p2 = scmp.ne.s32.totalorder %s940_s6, %s661_s11  ;;  %p663_p3 = pneg %p946_p0 }
  0x1d   : > { %s666_s21 = scalar_lea.hbm %s1175_s0, 256  ;;  %p667_p4 = scmp.lt.u32.totalorder %s940_s6, %s1175_s0 }
  0x1e   : > { %p664_p5 = pnand %p663_p3, %p662_p2  ;;  %p668_p7 = scmp.lt.u32.totalorder %s666_s21, %s661_s11 }
  0x1f   : > { %p670_p13 = scmp.lt.u32.totalorder %s661_s11, %s940_s6 }
  0x20   : > { %p665_p6 = pneg %p664_p5  ;;  %p669_p10 = por %p668_p7, %p667_p4 }
  0x22   : > { %p671_p12 = por %p670_p13, %p669_p10 }
  0x24   : > { %p672_p1 = pnand %p671_p12, %p665_p6 }
  0x26   : > { %675 = shalt.err (!%p672_p1)
}
  0x27   : > { %s676_s29 = scalar_lea.vmem %s942_s8, 128  ;;  %s841_s30 = smov [#allocation4]  }
  0x28   : > { %p677_p2 = scmp.ne.s32.totalorder %s942_s8, %s676_s29  ;;  %s681_s4 = sshll.u32 %s841_s30, 4  ;;  %s682_s4 = int_to_ptr.vmem [resolvable:$false] %s681_s4 }
  0x29   : > { %s683_s5 = scalar_lea.vmem %s682_s4, 256  ;;  %p684_p9 = scmp.lt.s32.totalorder %s942_s8, %s682_s4 }
  0x2a   : > { %p679_p5 = pnand %p677_p2, %p663_p3  ;;  %p685_p4 = scmp.lt.s32.totalorder %s683_s5, %s676_s29 }
  0x2c   : > { %p680_p11 = pneg %p679_p5  ;;  %p686_p7 = por %p685_p4, %p684_p9 }
  0x2e   : > { %p687_p10 = pnand %p686_p7, %p680_p11 }
  0x30   : > { %690 = shalt.err (!%p687_p10)
}
  0x31   : > { %s842_s7 = smov 32   ;;  %s843_s11 = smov 2  }
  0x32   : > { %587 = dma.hbm_to_vmem [thread:$0]  (!%p946_p0), %s940_s6, 128, %s942_s8, %s188_s10, %s842_s7, %s842_s7, %s843_s11  }
  0x33   : > { %p232_p12 = scmp.lt.s32.totalorder %s839_s17, 3  ;;  %s561_s18 = sshll.u32 %s933_s28, 1 }
  0x34   : > { %s562_s19 = sshll.u32 %s835_s16, 5  ;;  %p1186_p9 = scmp.ge.s32.totalorder %s839_s17, 1 }
  0x35   : > { %s991_s29 = scalar_lea.hbm %s1176_s1, %s562_s19  ;;  %s216_s30 = scalar_lea.vmem [#allocation7], %s561_s18 }
  0x36   : > { %p984_p11 = pnand %p1186_p9, %p232_p12  ;;  %s227_s4 = sshll.u32 %s216_s30, 4  ;;  %s228_s4 = int_to_ptr.vmem [resolvable:$true] %s227_s4 }
  0x37   : > { %s213_s6 = scalar_lea.sflag [#allocation8], %s933_s28  ;;  %s691_s8 = scalar_lea.hbm %s991_s29, 32 }
  0x38   : > { %s1187_s21 = scalar_select %p984_p11, 1, 0 }
  0x39   : > { %p692_p1 = scmp.ne.s32.totalorder %s991_s29, %s691_s8  ;;  %s696_s7 = scalar_lea.hbm %s1176_s1, 64 }
  0x3a   : > { %p697_p2 = scmp.lt.u32.totalorder %s991_s29, %s1176_s1  ;;  %p698_p5 = scmp.lt.u32.totalorder %s696_s7, %s691_s8 }
  0x3b   : > { %p694_p6 = pnand %p692_p1, %p663_p3  ;;  %p700_p7 = scmp.lt.u32.totalorder %s691_s8, %s991_s29 }
  0x3c   : > { %p699_p4 = por %p698_p5, %p697_p2 }
  0x3d   : > { %p695_p13 = pneg %p694_p6 }
  0x3e   : > { %p701_p10 = por %p700_p7, %p699_p4 }
  0x40   : > { %p702_p12 = pnand %p701_p10, %p695_p13 }
  0x42   : > { %705 = shalt.err (!%p702_p12)
}
  0x43   : > { %s706_s28 = scalar_lea.vmem %s228_s4, 32  ;;  %s844_s18 = smov [#allocation7]  }
  0x44   : > { %p707_p9 = scmp.ne.s32.totalorder %s228_s4, %s706_s28  ;;  %s711_s22 = sshll.u32 %s844_s18, 4  ;;  %s712_s22 = int_to_ptr.vmem [resolvable:$false] %s711_s22 }
  0x45   : > { %s713_s23 = scalar_lea.vmem %s712_s22, 64  ;;  %p714_p8 = scmp.lt.s32.totalorder %s228_s4, %s712_s22 }
  0x46   : > { %p709_p1 = pnand %p707_p9, %p663_p3  ;;  %p715_p11 = scmp.lt.s32.totalorder %s713_s23, %s706_s28 }
  0x48   : > { %p710_p6 = pneg %p709_p1  ;;  %p716_p2 = por %p715_p11, %p714_p8 }
  0x4a   : > { %p717_p5 = pnand %p716_p2, %p710_p6 }
  0x4c   : > { %720 = shalt.err (!%p717_p5)
}
  0x4d   : > { %590 = dma.hbm_to_vmem [thread:$0]  (!%p946_p0), %s991_s29, 32, %s228_s4, %s213_s6  }
  0x4e   : > { %p1188_p13 = scmp.ne.s32.totalorder %s1187_s21, 0 }
  0x4f   : > { %s1016_s30 = sand.u32 (!%p1188_p13), 1, %s823_s13   ;;  %p1189_p3 = scmp.ne.s32.totalorder (!%p1188_p13), %s1182_s24, 0 }
  0x50   : > { %236 = sbr.rel (%p1188_p13) target bundleno = 174 (0xae), region = 28  ;;  %s564_s8 = sshll.u32 (!%p1188_p13), %s1016_s30, 3 }
  0x51   : > { %s239_s10 = scalar_lea.sflag (!%p1188_p13), [#allocation5], %s1016_s30  ;;  %s242_s5 = scalar_lea.vmem (!%p1188_p13), [#allocation4], %s564_s8 }
  0x57   : > { %802 = dma.done.wait (%p1189_p3), %s239_s10, 128  }
  0x58   : > { %804 = vsyncadd (%p1189_p3), %s239_s10, 4294967168  ;;  %s1025_s9 = sshll.u32 %s1016_s30, 1  ;;  %s248_s21 = scalar_lea.sflag [#allocation8], %s1016_s30 }
  0x59   : > { %s251_s29 = scalar_lea.vmem [#allocation7], %s1025_s9 }
  0x5a   : > { %806 = dma.done.wait (%p1189_p3), %s248_s21, 32  }
  0x5b   : > { %808 = vsyncadd (%p1189_p3), %s248_s21, 4294967264  ;;  %v346_v0 = vlaneseq  ;;  %v845_v1 = vmov 0.0   ;;  %vm301_vm0 = vcmask 1041408   ;;  %v1033_v3 = vld [vmem:[%s251_s29] sm:$0x3]  ;;  %s283_s24 = scalar_lea.vmem [#allocation10], %s1025_s9 }
  0x5c   : > { %294 = vst [vmem:[#allocation2] sm:$0x3] %v845_v1  ;;  %295 = vst [vmem:[#allocation3] sm:$0x3] %v845_v1  ;;  %v1035_v4 = vld [vmem:[%s242_s5] sm:$0x3] }
  0x5d   : > { %v347_v2 = vshrl.u32 %v346_v0, 7  ;;  %v1037_v5 = vld [vmem:[%s242_s5 + $0x2] sm:$0x3]  ;;  %vm360_vm2 = vcmp.ne.s32.totalorder %v1033_v3, 4294967295  ;;  %v1040_v6 = vld [vmem:[%s242_s5 + $0x4] sm:$0x3] }
  0x5e   : > { %v1042_v7 = vld [vmem:[%s242_s5 + $0x6] sm:$0x3]  ;;  %v302_v8 = vsel %vm301_vm0, %v1035_v4, -inf  ;;  %v303_v10 = vsel %vm301_vm0, %v1037_v5, -inf  ;;  %v304_v11 = vsel %vm301_vm0, %v1040_v6, -inf  ;;  %s413_s4 = sshll.u32 %s283_s24, 4  ;;  %s1070_s4 = int_to_ptr.vmem [resolvable:$true] %s413_s4 }
  0x5f   : > { %vm355_vm1 = vcmp.lt.s32.totalorder %v347_v2, 2  ;;  %v305_v12 = vsel %vm301_vm0, %v1042_v7, -inf  ;;  %v306_v14 = vmax.f32 %v302_v8, %v303_v10  ;;  %s571_s6 = sshll.u32 %s831_s15, 5  ;;  %s385_s28 = scalar_lea.sflag [#allocation11], %s1016_s30 }
  0x60   : > { %vm1046_vm3 = vmand %vm360_vm2, %vm355_vm1  ;;  %v307_v15 = vmax.f32 %v304_v11, %v305_v12  ;;  %s1077_s19 = scalar_lea.hbm %s1178_s3, %s571_s6  ;;  %s721_s18 = scalar_lea.vmem %s1070_s4, 32 }
  0x61   : > { %v568_v13 = vsel %vm1046_vm3, 1.0, %v845_v1  ;;  %p722_p8 = scmp.ne.s32.totalorder %s1070_s4, %s721_s18  ;;  %p1192_p0 = scmp.ne.s32.totalorder %s1183_s25, 0 }
  0x62   : > { %v1058_v17 = vmax.f32 %v306_v14, %v307_v15  ;;  %s846_s22 = smov [#allocation10]  }
  0x63   : > { %v369_v16 = vld [vmem:[#allocation3] sm:$0x3]  ;;  %p723_p11 = pnand %p722_p8, %p1192_p0  ;;  %s725_s23 = sshll.u32 %s846_s22, 4  ;;  %s726_s23 = int_to_ptr.vmem [resolvable:$false] %s725_s23 }
  0x64   : > { %v370_v18 = vadd.f32 %v568_v13, %v369_v16  ;;  %v309_v19 = vsub.f32 %v1035_v4, %v1058_v17  ;;  %v310_v20 = vsub.f32 %v1037_v5, %v1058_v17  ;;  %v311_v21 = vsub.f32 %v1040_v6, %v1058_v17  ;;  %s727_s8 = scalar_lea.vmem %s726_s23, 64  ;;  %p728_p7 = scmp.lt.s32.totalorder %s1070_s4, %s726_s23 }
  0x65   : > { %v312_v22 = vsub.f32 %v1042_v7, %v1058_v17  ;;  %p724_p4 = pneg %p723_p11  ;;  %p729_p10 = scmp.lt.s32.totalorder %s727_s8, %s721_s18 }
  0x66   : > { %371 = vst [vmem:[#allocation3] sm:$0x3] %v370_v18  ;;  %v313_v23 = vmul.f32 1.442695, %v309_v19  ;;  %v315_v24 = vmul.f32 1.442695, %v310_v20 }
  0x67   : > { %v317_v25 = vmul.f32 1.442695, %v311_v21  ;;  %v319_v26 = vmul.f32 1.442695, %v312_v22  ;;  %p730_p12 = por %p729_p10, %p728_p7 }
  0x68   : > { %651 = vpow2.f32 %v313_v23 }
  0x69   : > { %653 = vpow2.f32 %v315_v24  ;;  %p731_p9 = pnand %p730_p12, %p724_p4 }
  0x6a   : > { %655 = vpow2.f32 %v317_v25 }
  0x6b   : > { %657 = vpow2.f32 %v319_v26 }
  0x6d   : > { %v377_v27 = vld [vmem:[#allocation3] sm:$0x3] }
  0x6e   : > { %378 = vst [vmem:[%s283_s24] sm:$0x3] %v377_v27 }
  0x6f   : > { %734 = shalt.err (!%p731_p9)
}
  0x70   : > { %s735_s10 = scalar_lea.hbm %s1077_s19, 32  ;;  %s739_s29 = scalar_lea.hbm %s1178_s3, 64 }
  0x71   : > { %p736_p1 = scmp.ne.s32.totalorder %s1077_s19, %s735_s10  ;;  %p740_p5 = scmp.lt.u32.totalorder %s1077_s19, %s1178_s3 }
  0x72   : > { %p741_p13 = scmp.lt.u32.totalorder %s739_s29, %s735_s10  ;;  %p743_p8 = scmp.lt.u32.totalorder %s735_s10, %s1077_s19 }
  0x73   : > { %p737_p6 = pnand %p736_p1, %p1192_p0 }
  0x74   : > { %p742_p3 = por %p741_p13, %p740_p5 }
  0x75   : > { %p738_p2 = pneg %p737_p6 }
  0x76   : > { %p744_p11 = por %p743_p8, %p742_p3 }
  0x78   : > { %p745_p4 = pnand %p744_p11, %p738_p2 }
  0x7a   : > { %748 = shalt.err (!%p745_p4)
}
  0x7b   : > { %581 = dma.vmem_to_hbm [thread:$0]  (%p1192_p0), %s1070_s4, 32, %s1077_s19, %s385_s28   ;;  %v652_v28 = vpop.eup %651  ;;  %vm331_vm4 = vcmp.eq.s32.totalorder %v1033_v3, 0  ;;  %vm332_vm5 = vcmp.eq.s32.totalorder %v1033_v3, 1  ;;  %vm333_vm6 = vcmp.eq.s32.totalorder %v1033_v3, 2  ;;  %vm334_vm7 = vcmp.eq.s32.totalorder %v1033_v3, 3 }
  0x7c   : > { %v654_v29 = vpop.eup %653  ;;  %v321_v30 = vsel %vm301_vm0, %v652_v28, 0.0  ;;  %v335_v38 = vsel %vm331_vm4, %v1035_v4, 0.0  ;;  %v336_v39 = vsel %vm332_vm5, %v1037_v5, 0.0  ;;  %v337_v43 = vsel %vm333_vm6, %v1040_v6, 0.0  ;;  %v366_v54 = vld [vmem:[#allocation2] sm:$0x3]  ;;  %s1128_s18 = scalar_lea.hbm %s1177_s2, %s571_s6 }
  0x7d   : > { %v656_v31 = vpop.eup %655  ;;  %v322_v32 = vsel %vm301_vm0, %v654_v29, 0.0  ;;  %v339_v41 = vsel %vm301_vm0, %v335_v38, 0.0  ;;  %v340_v42 = vsel %vm301_vm0, %v336_v39, 0.0  ;;  %v342_v45 = vsel %vm301_vm0, %v337_v43, 0.0  ;;  %s276_s4 = scalar_lea.vmem [#allocation9], %s1025_s9  ;;  %s380_s22 = scalar_lea.sflag [#allocation6], %s1016_s30 }
  0x7e   : > { %v658_v33 = vpop.eup %657  ;;  %v323_v34 = vadd.f32 %v322_v32, %v321_v30  ;;  %v324_v35 = vsel %vm301_vm0, %v656_v31, 0.0  ;;  %v341_v44 = vadd.f32 %v340_v42, %v339_v41  ;;  %v338_v46 = vsel %vm334_vm7, %v1042_v7, 0.0  ;;  %s399_s11 = sshll.u32 %s276_s4, 4  ;;  %s847_s9 = smov [#allocation9]   ;;  %s1121_s11 = int_to_ptr.vmem [resolvable:$true] %s399_s11 }
  0x7f   : > { %v326_v36 = vsel %vm301_vm0, %v658_v33, 0.0  ;;  %v344_v48 = vsel %vm301_vm0, %v338_v46, 0.0  ;;  %s749_s23 = scalar_lea.vmem %s1121_s11, 32  ;;  %s753_s8 = sshll.u32 %s847_s9, 4  ;;  %s754_s8 = int_to_ptr.vmem [resolvable:$false] %s753_s8 }
  0x80   : > { %v325_v37 = vadd.f32 %v324_v35, %v323_v34  ;;  %v343_v47 = vadd.f32 %v342_v45, %v341_v44  ;;  %p750_p7 = scmp.ne.s32.totalorder %s1121_s11, %s749_s23  ;;  %s755_s15 = scalar_lea.vmem %s754_s8, 64 }
  0x81   : > { %p756_p9 = scmp.lt.s32.totalorder %s1121_s11, %s754_s8  ;;  %p757_p1 = scmp.lt.s32.totalorder %s755_s15, %s749_s23 }
  0x82   : > { %v327_v40 = vadd.f32 %v326_v36, %v325_v37  ;;  %v345_v51 = vadd.f32 %v344_v48, %v343_v47  ;;  %p751_p10 = pnand %p750_p7, %p1192_p0 }
  0x83   : > { %p758_p6 = por %p757_p1, %p756_p9 }
  0x84   : > { %659 = vlog2.f32 %v327_v40  ;;  %p752_p12 = pneg %p751_p10 }
  0x86   : > { %p759_p2 = pnand %p758_p6, %p752_p12 }
  0x8e   : > { %v660_v49 = vpop.eup %659 }
  0x8f   : > { %v329_v50 = vmul.f32 0.6931472, %v660_v49 }
  0x91   : > { %v330_v52 = vadd.f32 %v329_v50, %v1058_v17 }
  0x93   : > { %v362_v53 = vsub.f32 %v330_v52, %v345_v51 }
  0x95   : > { %v363_v55 = vsel %vm1046_vm3, %v362_v53, 0.0 }
  0x96   : > { %v367_v56 = vadd.f32 %v366_v54, %v363_v55 }
  0x98   : > { %368 = vst [vmem:[#allocation2] sm:$0x3] %v367_v56 }
  0x9f   : > { %v375_v57 = vld [vmem:[#allocation2] sm:$0x3] }
  0xa0   : > { %376 = vst [vmem:[%s276_s4] sm:$0x3] %v375_v57 }
  0xa1   : > { %762 = shalt.err (!%p759_p2)
}
  0xa2   : > { %s763_s30 = scalar_lea.hbm %s1128_s18, 32  ;;  %s767_s5 = scalar_lea.hbm %s1177_s2, 64 }
  0xa3   : > { %p764_p5 = scmp.ne.s32.totalorder %s1128_s18, %s763_s30  ;;  %p768_p8 = scmp.lt.u32.totalorder %s1128_s18, %s1177_s2 }
  0xa4   : > { %p769_p11 = scmp.lt.u32.totalorder %s767_s5, %s763_s30  ;;  %p771_p7 = scmp.lt.u32.totalorder %s763_s30, %s1128_s18 }
  0xa5   : > { %p765_p13 = pnand %p764_p5, %p1192_p0 }
  0xa6   : > { %p770_p4 = por %p769_p11, %p768_p8 }
  0xa7   : > { %p766_p3 = pneg %p765_p13 }
  0xa8   : > { %p772_p10 = por %p771_p7, %p770_p4 }
  0xaa   : > { %p773_p12 = pnand %p772_p10, %p766_p3 }
  0xac   : > { %776 = shalt.err (!%p773_p12)
}
  0xad   : > { %580 = dma.vmem_to_hbm [thread:$0]  (%p1192_p0), %s1121_s11, 32, %s1128_s18, %s380_s22  }
  0xae PF: > { %s425_s24 = sand.u32 1, %s819_s12   ;;  %p1193_p9 = scmp.ne.s32.totalorder %s1184_s27, 0 }
  0xaf   : > { %p1194_p1 = scmp.ge.s32.totalorder %s839_s17, 2  ;;  %s426_s7 = scalar_lea.sflag [#allocation6], %s425_s24 }
  0xb1   : > { %p592_p6 = pnand %p1194_p1, %p1193_p9 }
  0xb3   : > { %810 = dma.done.wait (!%p592_p6), %s426_s7, 32  }
  0xb4   : > { %812 = vsyncadd (!%p592_p6), %s426_s7, 4294967264  ;;  %s435_s4 = scalar_lea.sflag [#allocation11], %s425_s24 }
  0xb5   : > { %814 = dma.done.wait (!%p592_p6), %s435_s4, 32  }
  0xb6   : > { %816 = vsyncadd (!%p592_p6), %s435_s4, 4294967264  ;;  %s26_s17 = sadd.s32 1, %s839_s17   ;;  %s1195_s12 = smov %s823_s13 }
  0xb7   : > { %p23_p2 = scmp.ge.s32.totalorder %s26_s17, 4   ;;  %s1196_s13 = smov %s827_s14 }
  0xb8   : > { %s1197_s14 = smov %s924_s26  ;;  %s1198_s15 = smov %s835_s16 }
  0xb9   : > { %s1199_s16 = smov %s1201_s20  ;;  %25 = sbr.rel (!%p23_p2) target bundleno = 10 (0xa), region = 111 }
  0xc0   :  { %440 = vsyncpa [#allocation5], 1 }
  0xc1   :  { %442 = vsyncpa [#allocation5 + $0x1], 1 }
  0xc2   :  { %443 = vsyncpa [#allocation8], 1 }
  0xc3   :  { %445 = vsyncpa [#allocation8 + $0x1], 1 }
  0xc4   :  { %446 = vsyncpa [#allocation6], 1 }
  0xc5   :  { %448 = vsyncpa [#allocation6 + $0x1], 1 }
  0xc6   :  { %449 = vsyncpa [#allocation11], 1 }
  0xc7   :  { %451 = vsyncpa [#allocation11 + $0x1], 1 }

</bundles_post_ra>
